<compile_context>
chip_gen: v5e
topology: v5e:2x2
jax: 0.10.0
libtpu: 0.0.40
codegen_flags: <defaults>
</compile_context>

<pallas_src>
import functools
import numpy as np

import jax
import jax.numpy as jnp
from jax.experimental import pallas as pl
from jax.experimental.pallas import tpu as pltpu


# ----------------------------------------------------------------------------
# Pallas kernel (one grid step == one (image, relation-tile) pair)
#
# kernel view:
#   logits_ref  : [C, Rt]    classes on sublanes, relations on lanes
#   pair_ref    : [2, Rt]    row0 = subject box idx, row1 = object box idx
#   boxes_t_ref : [8, Nb]    rows 0..3 = x1,y1,x2,y2 (rows 4..7 zero pad)
#   boxes_n_ref : [Nb, 4]    per-box coords on sublanes (for the bcast test)
#   out_ref     : [8, Rt]    row0=conf, row1=class(+1), row2=overlap flag
# ----------------------------------------------------------------------------
def _stsgg_kernel(logits_ref, pair_ref, boxes_t_ref, boxes_n_ref, out_ref):
    logits = logits_ref[...]                                   # [C, R] f32
    C, R = logits.shape

    # --- softmax over the class axis (sublanes) -------------------------------
    m = jnp.max(logits, axis=0, keepdims=True)                 # [1, R]
    e = jnp.exp(logits - m)                                    # [C, R]
    denom = jnp.sum(e, axis=0, keepdims=True)                  # [1, R]
    inv_denom = pl.reciprocal(denom, approx=True)              # EUP slot (~free)

    # --- foreground max / argmax on the UNNORMALIZED exp (scale invariant);
    #     conf is normalized once at the end (saves a full [C,R] multiply).
    #     argmax returned as absolute class index == torch argmax-over-[1:] + 1.
    cls_iota = jax.lax.broadcasted_iota(jnp.int32, (C, R), 0)
    fg = cls_iota >= 1
    masked = jnp.where(fg, e, -1.0)                            # e > 0 always
    max_e = jnp.max(masked, axis=0, keepdims=True)             # [1, R]
    conf = max_e * inv_denom                                   # [1, R]
    is_max = jnp.logical_and(masked >= max_e, fg)
    # first (lowest) maximal class index via a float max-reduce (exact: C < 2^24)
    inv_idx = jnp.where(is_max, (C - cls_iota).astype(jnp.float32), 0.0)
    cls_f = C - jnp.max(inv_idx, axis=0, keepdims=True)        # [1, R] f32

    # --- per-relation overlap test, [Nb, R] lane-dense formulation ------------
    pair = pair_ref[...]                                       # [2, R] i32
    s_row = pair[0:1, :]                                       # [1, R]
    o_row = pair[1:2, :]
    boxes_t = boxes_t_ref[...]                                 # [8, Nb]
    boxes_n = boxes_n_ref[...]                                 # [Nb, 4]
    Nb = boxes_n.shape[0]

    box_iota = jax.lax.broadcasted_iota(jnp.int32, (Nb, R), 0)
    eq_s = box_iota == s_row                                   # [Nb, R] (reused)
    eq_o = box_iota == o_row
    oh_s = eq_s.astype(jnp.float32)

    # subject-box coordinate gather on the MXU: [8,Nb] @ [Nb,R] -> [8,R]
    sub = jnp.dot(boxes_t, oh_s, preferred_element_type=jnp.float32)
    sx1 = sub[0:1, :]
    sy1 = sub[1:2, :]
    sx2 = sub[2:3, :]
    sy2 = sub[3:4, :]

    bx1 = boxes_n[:, 0:1]                                      # [Nb, 1]
    by1 = boxes_n[:, 1:2]
    bx2 = boxes_n[:, 2:3]
    by2 = boxes_n[:, 3:4]

    # intersection of each relation's subject box with every box: [Nb, R].
    # zero-padded boxes give inter == 0 -> never overlap.
    w = jnp.maximum(jnp.minimum(sx2, bx2) - jnp.maximum(sx1, bx1), 0.0)
    h = jnp.maximum(jnp.minimum(sy2, by2) - jnp.maximum(sy1, by1), 0.0)
    inter = w * h
    ov_val = jnp.where(eq_s, 0.0, inter)                       # diagonal removed

    ov_pair = jnp.max(jnp.where(eq_o, ov_val, 0.0), axis=0, keepdims=True)
    row_any = jnp.max(ov_val, axis=0, keepdims=True)
    # degenerate (s == o) pair matches the torch "==2" criterion iff the subject
    # box overlaps with *any* other box:
    ov = jnp.where(s_row == o_row, row_any, ov_pair) > 0.0     # [1, R] bool

    # --- lane-dense output: full-lane row stores -------------------------------
    out_ref[0:1, :] = conf
    out_ref[1:2, :] = cls_f
    out_ref[2:3, :] = ov.astype(jnp.float32)
    out_ref[3:8, :] = jnp.zeros((5, R), jnp.float32)           # deterministic pad


@functools.lru_cache(maxsize=None)
def _build_call(B, R_pad, R_tile, C, Nb):
    n_r = R_pad // R_tile
    call = pl.pallas_call(
        _stsgg_kernel,
        out_shape=jax.ShapeDtypeStruct((B, 8, R_pad), jnp.float32),
        grid_spec=pltpu.PrefetchScalarGridSpec(
            num_scalar_prefetch=0,
            grid=(B, n_r),
            in_specs=[
                pl.BlockSpec((None, C, R_tile), lambda b, r: (b, 0, r)),   # logits^T
                pl.BlockSpec((None, 2, R_tile), lambda b, r: (b, 0, r)),   # pairs^T
                pl.BlockSpec((None, 8, Nb), lambda b, r: (b, 0, 0)),       # boxes^T
                pl.BlockSpec((None, Nb, 4), lambda b, r: (b, 0, 0)),       # boxes
            ],
            out_specs=pl.BlockSpec((None, 8, R_tile), lambda b, r: (b, 0, r)),
        ),
        compiler_params=pltpu.CompilerParams(
            dimension_semantics=("parallel", "parallel")),   # shard across TCs
    )
    return jax.jit(call)


def _round_up(x, m):
    return ((x + m - 1) // m) * m


def _pow2_at_least(x):
    return 1 << (max(int(x), 1) - 1).bit_length()


def _pick_r_tile(r_pad):
    if r_pad % 512 == 0:
        return 512
    if r_pad % 256 == 0:
        return 256
    return 128


# ----------------------------------------------------------------------------
# ST_SGG module (host-side state + numpy glue around the Pallas kernel)
# ----------------------------------------------------------------------------
class ST_SGG:
    def __init__(self, num_obj_cls=16, num_rel_cls=32, alpha=0.5, alpha_decay=0.7,
                 save_period=0, use_gsl_output=False):
        # class index is round-tripped through float32 in the packed output
        assert num_rel_cls < (1 << 24), "class index must be exact in float32"
        self.num_obj_cls = num_obj_cls
        self.num_rel_cls = num_rel_cls
        self.alpha = alpha
        self.alpha_decay = alpha_decay
        self.save_period = save_period
        self.use_gsl_output = use_gsl_output

        # Synthetic, deterministic replacement for torch.load('obj_pred_info_*')
        pred_count = np.arange(1, num_rel_cls, dtype=np.int64) * 10 + 5
        pred_count = np.concatenate([np.array([0], dtype=np.int64), pred_count])
        self.pred_count = pred_count
        num_max = pred_count.max()
        temp = 1.0 / np.exp(np.log(1.0) / self.alpha) * num_max - num_max
        self.lambda_inc = (pred_count / (num_max + temp)) ** self.alpha
        self.lambda_dec = np.zeros(len(self.lambda_inc), dtype=np.float64)
        ind = np.argsort(self.lambda_inc, kind="stable")
        temp2 = 1.0 / np.exp(np.log(1.0) / self.alpha_decay) * num_max - num_max
        temp_lambda_inc = (pred_count / (num_max + temp2)) ** self.alpha_decay
        for i, idx in enumerate(ind):
            if idx == 0:
                continue
            self.lambda_dec[idx] = temp_lambda_inc[ind[len(temp_lambda_inc) - i]]

        self.pred_threshold = np.zeros(num_rel_cls, dtype=np.float32) + 1e-6
        self.n_pseudo_info = {}
        self.n_cumulative_class = np.zeros(num_rel_cls, dtype=np.int32)
        self.forward_time = 0
        self.pseudo_label_info = {i: [] for i in range(num_rel_cls)}
        self.batch_decrease_conf_dict = {i: [] for i in range(num_rel_cls)}
        self.batch_increase_conf_dict = {i: [] for i in range(num_rel_cls)}

    # ------------------------------------------------------------------------
    # Batched Pallas hot path: one call per forward() for ALL images.
    # Returns a list of per-image (conf, cls, overlap_flag) numpy arrays,
    # already sliced back to each image's true relation count.
    # ------------------------------------------------------------------------
    def _batched_kernel_outputs(self, pred_rel_logits, rel_pair_idxs, inst_boxes):
        B = len(pred_rel_logits)
        logits_np = [np.asarray(l, np.float32) for l in pred_rel_logits]
        pairs_np = [np.asarray(p, np.int32) for p in rel_pair_idxs]
        boxes_np = [np.asarray(b, np.float32) for b in inst_boxes]

        Rs = [l.shape[0] for l in logits_np]
        Nbs = [b.shape[0] for b in boxes_np]
        C = logits_np[0].shape[1]

        # bucketed shapes -> stable compile cache & bounded per-step blocks
        B_pad = max(2, _pow2_at_least(B))              # even => both v7x TCs busy
        R_pad = max(_round_up(max(Rs), 128), 128)
        R_tile = _pick_r_tile(R_pad)
        Nb_pad = max(_pow2_at_least(max(Nbs)), 8)

        # TODO(synk): per-image true R via scalar prefetch would skip padded-row
        # compute for very uneven batches; not needed at these sizes.
        logits_p = np.zeros((B_pad, C, R_pad), np.float32)
        pairs_p = np.zeros((B_pad, 2, R_pad), np.int32)
        boxes_t_p = np.zeros((B_pad, 8, Nb_pad), np.float32)   # rows 4..7 = 0
        boxes_n_p = np.zeros((B_pad, Nb_pad, 4), np.float32)   # zero boxes never overlap
        for b in range(B):
            logits_p[b, :, :Rs[b]] = logits_np[b].T
            pairs_p[b, :, :Rs[b]] = pairs_np[b].T
            boxes_t_p[b, :4, :Nbs[b]] = boxes_np[b].T
            boxes_n_p[b, :Nbs[b], :] = boxes_np[b]

        call = _build_call(B_pad, R_pad, R_tile, C, Nb_pad)
        packed = call(jnp.asarray(logits_p), jnp.asarray(pairs_p),
                      jnp.asarray(boxes_t_p), jnp.asarray(boxes_n_p))
        packed = np.asarray(jax.block_until_ready(packed))     # single D2H per forward

        outs = []
        for b in range(B):
            r = Rs[b]
            conf = packed[b, 0, :r]
            cls = packed[b, 1, :r].astype(np.int64)
            ov = packed[b, 2, :r] > 0.5
            outs.append((conf, cls, ov))
        return outs

    def update_class_threshold(self, rel_pseudo_labels, one_hot_gt_or_pseudo):
        """Adaptive thresholding (EMA) — pure host numpy bookkeeping."""
        concat = np.concatenate([np.asarray(r) for r in rel_pseudo_labels])
        mask = np.asarray(one_hot_gt_or_pseudo) != 0
        pseudo_label_set = set(np.unique(concat[mask]).tolist())
        for p in range(self.num_rel_cls):
            if p == 0:
                continue
            if p not in pseudo_label_set:
                if len(self.batch_decrease_conf_dict[p]) > 0:
                    decay_conf = float(np.mean(self.batch_decrease_conf_dict[p]))
                    self.pred_threshold[p] = (self.pred_threshold[p] * (1.0 - self.lambda_dec[p])
                                              + decay_conf * self.lambda_dec[p])
            elif len(self.batch_increase_conf_dict[p]) > 0:
                mean_conf = float(np.mean(self.batch_increase_conf_dict[p]))
                self.pred_threshold[p] = ((1.0 - self.lambda_inc[p]) * self.pred_threshold[p]
                                          + self.lambda_inc[p] * mean_conf)
        for i in range(self.num_rel_cls):
            self.batch_increase_conf_dict[i].clear()
            self.batch_decrease_conf_dict[i].clear()

    def forward(self, rel_pair_idxs, inst_boxes, rel_labels, pred_rel_logits,
                gsl_outputs=None):
        rel_pseudo_labels = []
        gt_or_pseudo_list = []
        n_class = np.zeros(self.num_rel_cls, dtype=np.float32)

        # Single batched Pallas call + single device->host transfer.
        kernel_outs = self._batched_kernel_outputs(pred_rel_logits, rel_pair_idxs,
                                                   inst_boxes)

        for i, (rel_pair, (conf, cls, ov)) in enumerate(zip(rel_pair_idxs, kernel_outs)):
            rel_pair_np = np.asarray(rel_pair, dtype=np.int64)
            labels = np.asarray(rel_labels[i], dtype=np.int64)
            n_annot = int(np.count_nonzero(labels))

            # per-class threshold gather done on host (cls is on host anyway)
            thr_sel = self.pred_threshold[cls]

            overlap_idx = ov[n_annot:]
            # TODO(synk): gsl_outputs branch not wired (use_gsl_output=False here).
            valid = (conf >= thr_sel)[n_annot:] & overlap_idx
            no_valid = (conf < thr_sel)[n_annot:] & overlap_idx

            max_class_thres = np.zeros(self.num_rel_cls)
            valid_conf = conf[n_annot:][valid]
            order = np.argsort(-valid_conf, kind="stable")       # descending
            valid_conf_sorted = valid_conf[order]
            valid_pseudo_label = cls[n_annot:][valid][order]
            relative_idx = np.nonzero(valid)[0][order]

            for p, c, rel_idx in zip(valid_pseudo_label, valid_conf_sorted, relative_idx):
                p = int(p)
                c = float(c)
                if self.pred_threshold[p] <= c:
                    max_class_thres[p] += 1
                    self.batch_increase_conf_dict[p].append(c)
                    if max_class_thres[p] > 3:
                        valid[rel_idx] = False
                        continue
                    n_class[p] += 1
                else:
                    valid[rel_idx] = False

            for p, c in zip(cls[n_annot:][no_valid], conf[n_annot:][no_valid]):
                self.batch_decrease_conf_dict[int(p)].append(float(c))

            rel_pseudo_label = labels.copy()
            rel_pseudo_label[n_annot:][valid] = cls[n_annot:][valid]
            rel_pseudo_labels.append(jnp.asarray(rel_pseudo_label))

            gt_or_pseudo = np.zeros(len(rel_pair_np), dtype=np.int64)
            gt_or_pseudo[n_annot:][valid] = 1
            gt_or_pseudo_list.append(gt_or_pseudo)

        if len(rel_pseudo_labels) == 0:
            rel_pseudo_labels = None
        for c in range(self.num_rel_cls):
            if c == 0 or n_class[c] == 0:
                continue
            self.n_cumulative_class[c] += int(n_class[c])
        self.forward_time += 1
        return rel_pseudo_labels, jnp.asarray(np.concatenate(gt_or_pseudo_list))


# ----------------------------------------------------------------------------
# Pure-numpy reference for the kernel outputs (correctness check)
# ----------------------------------------------------------------------------
def _kernel_ref(logits, rel_pair, boxes):
    logits = np.asarray(logits, np.float32)
    boxes = np.asarray(boxes, np.float32)
    rel_pair = np.asarray(rel_pair, np.int64)
    e = np.exp(logits - logits.max(-1, keepdims=True))
    probs = e / e.sum(-1, keepdims=True)
    conf = probs[:, 1:].max(-1)
    cls = probs[:, 1:].argmax(-1) + 1
    lt = np.maximum(boxes[:, None, :2], boxes[None, :, :2])
    rb = np.minimum(boxes[:, None, 2:], boxes[None, :, 2:])
    wh = np.clip(rb - lt, 0.0, None)
    inter = wh[:, :, 0] * wh[:, :, 1]
    overlap = (inter > 0)
    np.fill_diagonal(overlap, False)
    s, o = rel_pair[:, 0], rel_pair[:, 1]
    ov = np.where(s == o, overlap[s].any(-1), overlap[s, o])
    return conf, cls, ov


# ----------------------------------------------------------------------------
if __name__ == "__main__":
    key = jax.random.PRNGKey(0)
    B, N_REL, N_BOX, NUM_REL_CLS = 2, 16, 8, 32

    model = ST_SGG(num_obj_cls=16, num_rel_cls=NUM_REL_CLS)

    rel_pair_idxs, boxes_list, rel_labels, logits_list = [], [], [], []
    for b in range(B):
        key, k1, k2, k3, k4, k5 = jax.random.split(key, 6)
        xy = jax.random.uniform(k1, (N_BOX, 2), minval=0.0, maxval=50.0)
        wh = jax.random.uniform(k2, (N_BOX, 2), minval=5.0, maxval=40.0)
        boxes = jnp.concatenate([xy, xy + wh], axis=1)            # [N_box, 4]
        s = jax.random.randint(k3, (N_REL,), 0, N_BOX)
        o_raw = jax.random.randint(k4, (N_REL,), 0, N_BOX - 1)
        o = jnp.where(o_raw >= s, o_raw + 1, o_raw)               # subject != object
        rel_pair = jnp.stack([s, o], axis=1)                      # [N_rel, 2]
        logits = jax.random.normal(k5, (N_REL, NUM_REL_CLS), dtype=jnp.float32) * 2.0
        labels = np.zeros(N_REL, dtype=np.int64)
        labels[:4] = np.array([3, 7, 1, 12])                      # first 4 = GT annotated
        rel_pair_idxs.append(rel_pair)
        boxes_list.append(boxes)
        rel_labels.append(labels)
        logits_list.append(logits)

    # Run the full forward pass (one batched Pallas call + host glue).
    rel_pseudo_labels, gt_or_pseudo = model.forward(
        rel_pair_idxs, boxes_list, rel_labels, logits_list)
    jax.block_until_ready(gt_or_pseudo)
    for r in rel_pseudo_labels:
        jax.block_until_ready(r)

    # Exercise the EMA threshold update (host numpy path).
    model.update_class_threshold(rel_pseudo_labels, gt_or_pseudo)

    # Sanity-check the Pallas kernel outputs against a pure numpy reference.
    # conf tolerance relaxed: pl.reciprocal(approx=True) gives ~1e-3 relative
    # error on the softmax denominator; cls / overlap are compared exactly.
    kernel_outs = model._batched_kernel_outputs(
        logits_list, [np.asarray(p) for p in rel_pair_idxs], boxes_list)
    for b in range(B):
        conf, cls, ov = kernel_outs[b]
        rconf, rcls, rov = _kernel_ref(
            logits_list[b], np.asarray(rel_pair_idxs[b]), np.asarray(boxes_list[b]))
        np.testing.assert_allclose(conf, rconf, rtol=5e-3, atol=1e-6)
        np.testing.assert_array_equal(cls, rcls)
        np.testing.assert_array_equal(ov, rov)
        # host-side threshold gather (moved out of the kernel) is trivially
        # pred_threshold[cls]; check it too for completeness
        np.testing.assert_allclose(model.pred_threshold[cls],
                                   model.pred_threshold[rcls], rtol=1e-6)

    print("KERNEL_OK")
</pallas_src>

<mosaic_0001>
module attributes {stable_mosaic.version = 11 : i64} {
  func.func @_stsgg_kernel(%arg0: i32, %arg1: i32, %arg2: memref<1x32x128xf32, #tpu.memory_space<vmem>>, %arg3: memref<1x2x128xi32, #tpu.memory_space<vmem>>, %arg4: memref<1x8x8xf32, #tpu.memory_space<vmem>>, %arg5: memref<1x8x4xf32, #tpu.memory_space<vmem>>, %arg6: memref<1x8x128xf32, #tpu.memory_space<vmem>>) attributes {dimension_semantics = [#tpu.dimension_semantics<parallel>, #tpu.dimension_semantics<parallel>], iteration_bounds = array<i64: 2, 1>, scalar_prefetch = 0 : i64, scratch_operands = 0 : i64, tpu.core_type = #tpu.core_type<tc>, window_params = [{transform_indices = @transform_0, window_bounds = array<i64: 1, 32, 128>}, {transform_indices = @transform_1, window_bounds = array<i64: 1, 2, 128>}, {transform_indices = @transform_2, window_bounds = array<i64: 1, 8, 8>}, {transform_indices = @transform_3, window_bounds = array<i64: 1, 8, 4>}, {transform_indices = @transform_4, window_bounds = array<i64: 1, 8, 128>}]} {
    %c0 = arith.constant 0 : index
    %c0_0 = arith.constant 0 : index
    %c0_1 = arith.constant 0 : index
    %0 = vector.load %arg2[%c0, %c0_0, %c0_1] : memref<1x32x128xf32, #tpu.memory_space<vmem>>, vector<1x32x128xf32>
    %1 = vector.shape_cast %0 : vector<1x32x128xf32> to vector<32x128xf32>
    %cst = arith.constant dense<0xFF800000> : vector<128xf32>
    %2 = vector.multi_reduction <maximumf>, %1, %cst [0] : vector<32x128xf32> to vector<128xf32>
    %3 = vector.shape_cast %2 : vector<128xf32> to vector<1x128xf32>
    %4 = vector.broadcast %3 : vector<1x128xf32> to vector<32x128xf32>
    %5 = arith.subf %1, %4 : vector<32x128xf32>
    %6 = math.exp %5 : vector<32x128xf32>
    %cst_2 = arith.constant dense<0.000000e+00> : vector<128xf32>
    %7 = vector.multi_reduction <add>, %6, %cst_2 [0] : vector<32x128xf32> to vector<128xf32>
    %8 = vector.shape_cast %7 : vector<128xf32> to vector<1x128xf32>
    %9 = tpu.reciprocal %8 {approx = true} : vector<1x128xf32> -> vector<1x128xf32>
    %10 = tpu.iota {dimensions = array<i32: 0>} : vector<32x128xi32>
    %c1_i32 = arith.constant 1 : i32
    %11 = vector.broadcast %c1_i32 : i32 to vector<32x128xi32>
    %12 = arith.cmpi sge, %10, %11 : vector<32x128xi32>
    %cst_3 = arith.constant -1.000000e+00 : f32
    %13 = vector.broadcast %cst_3 : f32 to vector<32x128xf32>
    %14 = arith.select %12, %6, %13 : vector<32x128xi1>, vector<32x128xf32>
    %cst_4 = arith.constant dense<0xFF800000> : vector<128xf32>
    %15 = vector.multi_reduction <maximumf>, %14, %cst_4 [0] : vector<32x128xf32> to vector<128xf32>
    %16 = vector.shape_cast %15 : vector<128xf32> to vector<1x128xf32>
    %17 = arith.mulf %16, %9 : vector<1x128xf32>
    %18 = vector.broadcast %16 : vector<1x128xf32> to vector<32x128xf32>
    %19 = arith.cmpf oge, %14, %18 : vector<32x128xf32>
    %20 = arith.andi %19, %12 : vector<32x128xi1>
    %c32_i32 = arith.constant 32 : i32
    %21 = vector.broadcast %c32_i32 : i32 to vector<32x128xi32>
    %22 = arith.subi %21, %10 : vector<32x128xi32>
    %23 = arith.sitofp %22 : vector<32x128xi32> to vector<32x128xf32>
    %cst_5 = arith.constant 0.000000e+00 : f32
    %24 = vector.broadcast %cst_5 : f32 to vector<32x128xf32>
    %25 = arith.select %20, %23, %24 : vector<32x128xi1>, vector<32x128xf32>
    %cst_6 = arith.constant dense<0xFF800000> : vector<128xf32>
    %26 = vector.multi_reduction <maximumf>, %25, %cst_6 [0] : vector<32x128xf32> to vector<128xf32>
    %27 = vector.shape_cast %26 : vector<128xf32> to vector<1x128xf32>
    %cst_7 = arith.constant 3.200000e+01 : f32
    %28 = vector.broadcast %cst_7 : f32 to vector<1x128xf32>
    %29 = arith.subf %28, %27 : vector<1x128xf32>
    %c0_8 = arith.constant 0 : index
    %c0_9 = arith.constant 0 : index
    %c0_10 = arith.constant 0 : index
    %30 = vector.load %arg3[%c0_8, %c0_9, %c0_10] : memref<1x2x128xi32, #tpu.memory_space<vmem>>, vector<1x2x128xi32>
    %31 = vector.shape_cast %30 : vector<1x2x128xi32> to vector<2x128xi32>
    %32 = vector.extract_strided_slice %31 {offsets = [0, 0], sizes = [1, 128], strides = [1, 1]} : vector<2x128xi32> to vector<1x128xi32>
    %33 = vector.extract_strided_slice %31 {offsets = [1, 0], sizes = [1, 128], strides = [1, 1]} : vector<2x128xi32> to vector<1x128xi32>
    %c0_11 = arith.constant 0 : index
    %c0_12 = arith.constant 0 : index
    %c0_13 = arith.constant 0 : index
    %34 = vector.load %arg4[%c0_11, %c0_12, %c0_13] : memref<1x8x8xf32, #tpu.memory_space<vmem>>, vector<1x8x8xf32>
    %35 = vector.shape_cast %34 : vector<1x8x8xf32> to vector<8x8xf32>
    %c0_14 = arith.constant 0 : index
    %c0_15 = arith.constant 0 : index
    %c0_16 = arith.constant 0 : index
    %36 = vector.load %arg5[%c0_14, %c0_15, %c0_16] : memref<1x8x4xf32, #tpu.memory_space<vmem>>, vector<1x8x4xf32>
    %37 = vector.shape_cast %36 : vector<1x8x4xf32> to vector<8x4xf32>
    %38 = tpu.iota {dimensions = array<i32: 0>} : vector<8x128xi32>
    %39 = vector.broadcast %32 : vector<1x128xi32> to vector<8x128xi32>
    %40 = arith.cmpi eq, %38, %39 : vector<8x128xi32>
    %41 = vector.broadcast %33 : vector<1x128xi32> to vector<8x128xi32>
    %42 = arith.cmpi eq, %38, %41 : vector<8x128xi32>
    %43 = arith.extui %40 : vector<8x128xi1> to vector<8x128xi32>
    %44 = arith.sitofp %43 : vector<8x128xi32> to vector<8x128xf32>
    %cst_17 = arith.constant dense<0.000000e+00> : vector<8x128xf32>
    %45 = tpu.matmul %35, %44, %cst_17 {dimension_numbers = #tpu.dot_dimension_numbers<[1], [0], [0], [1], [0, 0, 1, 1], [], []>} : vector<8x8xf32>, vector<8x128xf32>, vector<8x128xf32> -> vector<8x128xf32>
    %46 = vector.extract_strided_slice %45 {offsets = [0, 0], sizes = [1, 128], strides = [1, 1]} : vector<8x128xf32> to vector<1x128xf32>
    %47 = vector.extract_strided_slice %45 {offsets = [1, 0], sizes = [1, 128], strides = [1, 1]} : vector<8x128xf32> to vector<1x128xf32>
    %48 = vector.extract_strided_slice %45 {offsets = [2, 0], sizes = [1, 128], strides = [1, 1]} : vector<8x128xf32> to vector<1x128xf32>
    %49 = vector.extract_strided_slice %45 {offsets = [3, 0], sizes = [1, 128], strides = [1, 1]} : vector<8x128xf32> to vector<1x128xf32>
    %50 = vector.extract_strided_slice %37 {offsets = [0, 0], sizes = [8, 1], strides = [1, 1]} : vector<8x4xf32> to vector<8x1xf32>
    %51 = vector.extract_strided_slice %37 {offsets = [0, 1], sizes = [8, 1], strides = [1, 1]} : vector<8x4xf32> to vector<8x1xf32>
    %52 = vector.extract_strided_slice %37 {offsets = [0, 2], sizes = [8, 1], strides = [1, 1]} : vector<8x4xf32> to vector<8x1xf32>
    %53 = vector.extract_strided_slice %37 {offsets = [0, 3], sizes = [8, 1], strides = [1, 1]} : vector<8x4xf32> to vector<8x1xf32>
    %54 = vector.broadcast %48 : vector<1x128xf32> to vector<8x128xf32>
    %55 = vector.broadcast %52 : vector<8x1xf32> to vector<8x128xf32>
    %56 = arith.minimumf %54, %55 : vector<8x128xf32>
    %57 = vector.broadcast %46 : vector<1x128xf32> to vector<8x128xf32>
    %58 = vector.broadcast %50 : vector<8x1xf32> to vector<8x128xf32>
    %59 = arith.maximumf %57, %58 : vector<8x128xf32>
    %60 = arith.subf %56, %59 : vector<8x128xf32>
    %cst_18 = arith.constant 0.000000e+00 : f32
    %61 = vector.broadcast %cst_18 : f32 to vector<8x128xf32>
    %62 = arith.maximumf %60, %61 : vector<8x128xf32>
    %63 = vector.broadcast %49 : vector<1x128xf32> to vector<8x128xf32>
    %64 = vector.broadcast %53 : vector<8x1xf32> to vector<8x128xf32>
    %65 = arith.minimumf %63, %64 : vector<8x128xf32>
    %66 = vector.broadcast %47 : vector<1x128xf32> to vector<8x128xf32>
    %67 = vector.broadcast %51 : vector<8x1xf32> to vector<8x128xf32>
    %68 = arith.maximumf %66, %67 : vector<8x128xf32>
    %69 = arith.subf %65, %68 : vector<8x128xf32>
    %cst_19 = arith.constant 0.000000e+00 : f32
    %70 = vector.broadcast %cst_19 : f32 to vector<8x128xf32>
    %71 = arith.maximumf %69, %70 : vector<8x128xf32>
    %72 = arith.mulf %62, %71 : vector<8x128xf32>
    %cst_20 = arith.constant 0.000000e+00 : f32
    %73 = vector.broadcast %cst_20 : f32 to vector<8x128xf32>
    %74 = arith.select %40, %73, %72 : vector<8x128xi1>, vector<8x128xf32>
    %cst_21 = arith.constant 0.000000e+00 : f32
    %75 = vector.broadcast %cst_21 : f32 to vector<8x128xf32>
    %76 = arith.select %42, %74, %75 : vector<8x128xi1>, vector<8x128xf32>
    %cst_22 = arith.constant dense<0xFF800000> : vector<128xf32>
    %77 = vector.multi_reduction <maximumf>, %76, %cst_22 [0] : vector<8x128xf32> to vector<128xf32>
    %78 = vector.shape_cast %77 : vector<128xf32> to vector<1x128xf32>
    %cst_23 = arith.constant dense<0xFF800000> : vector<128xf32>
    %79 = vector.multi_reduction <maximumf>, %74, %cst_23 [0] : vector<8x128xf32> to vector<128xf32>
    %80 = vector.shape_cast %79 : vector<128xf32> to vector<1x128xf32>
    %81 = arith.cmpi eq, %32, %33 : vector<1x128xi32>
    %82 = arith.select %81, %80, %78 : vector<1x128xi1>, vector<1x128xf32>
    %cst_24 = arith.constant 0.000000e+00 : f32
    %83 = vector.broadcast %cst_24 : f32 to vector<1x128xf32>
    %84 = arith.cmpf ogt, %82, %83 : vector<1x128xf32>
    %c0_25 = arith.constant 0 : index
    %c0_26 = arith.constant 0 : index
    %c0_27 = arith.constant 0 : index
    %85 = vector.load %arg6[%c0_25, %c0_26, %c0_27] : memref<1x8x128xf32, #tpu.memory_space<vmem>>, vector<1x1x128xf32>
    %86 = vector.shape_cast %85 : vector<1x1x128xf32> to vector<1x128xf32>
    %87 = vector.shape_cast %17 : vector<1x128xf32> to vector<1x1x128xf32>
    tpu.vector_store %arg6[%c0_25, %c0_26, %c0_27], %87 {strides = array<i32>} : memref<1x8x128xf32, #tpu.memory_space<vmem>>, vector<1x1x128xf32>,
    %c0_28 = arith.constant 0 : index
    %c1 = arith.constant 1 : index
    %c0_29 = arith.constant 0 : index
    %88 = vector.load %arg6[%c0_28, %c1, %c0_29] : memref<1x8x128xf32, #tpu.memory_space<vmem>>, vector<1x1x128xf32>
    %89 = vector.shape_cast %88 : vector<1x1x128xf32> to vector<1x128xf32>
    %90 = vector.shape_cast %29 : vector<1x128xf32> to vector<1x1x128xf32>
    tpu.vector_store %arg6[%c0_28, %c1, %c0_29], %90 {strides = array<i32>} : memref<1x8x128xf32, #tpu.memory_space<vmem>>, vector<1x1x128xf32>,
    %91 = arith.extui %84 : vector<1x128xi1> to vector<1x128xi32>
    %92 = arith.sitofp %91 : vector<1x128xi32> to vector<1x128xf32>
    %c0_30 = arith.constant 0 : index
    %c2 = arith.constant 2 : index
    %c0_31 = arith.constant 0 : index
    %93 = vector.load %arg6[%c0_30, %c2, %c0_31] : memref<1x8x128xf32, #tpu.memory_space<vmem>>, vector<1x1x128xf32>
    %94 = vector.shape_cast %93 : vector<1x1x128xf32> to vector<1x128xf32>
    %95 = vector.shape_cast %92 : vector<1x128xf32> to vector<1x1x128xf32>
    tpu.vector_store %arg6[%c0_30, %c2, %c0_31], %95 {strides = array<i32>} : memref<1x8x128xf32, #tpu.memory_space<vmem>>, vector<1x1x128xf32>,
    %cst_32 = arith.constant 0.000000e+00 : f32
    %96 = vector.broadcast %cst_32 : f32 to vector<5x128xf32>
    %c0_33 = arith.constant 0 : index
    %c3 = arith.constant 3 : index
    %c0_34 = arith.constant 0 : index
    %97 = vector.load %arg6[%c0_33, %c3, %c0_34] : memref<1x8x128xf32, #tpu.memory_space<vmem>>, vector<1x5x128xf32>
    %98 = vector.shape_cast %97 : vector<1x5x128xf32> to vector<5x128xf32>
    %99 = vector.shape_cast %96 : vector<5x128xf32> to vector<1x5x128xf32>
    tpu.vector_store %arg6[%c0_33, %c3, %c0_34], %99 {strides = array<i32>} : memref<1x8x128xf32, #tpu.memory_space<vmem>>, vector<1x5x128xf32>,
    return
  }
  func.func @transform_0(%arg0: i32, %arg1: i32) -> (i32, i32, i32) {
    %c0_i32 = arith.constant 0 : i32
    %c0_i32_0 = arith.constant 0 : i32
    return %arg0, %c0_i32, %arg1 : i32, i32, i32
  }
  func.func @transform_1(%arg0: i32, %arg1: i32) -> (i32, i32, i32) {
    %c0_i32 = arith.constant 0 : i32
    %c0_i32_0 = arith.constant 0 : i32
    return %arg0, %c0_i32, %arg1 : i32, i32, i32
  }
  func.func @transform_2(%arg0: i32, %arg1: i32) -> (i32, i32, i32) {
    %c0_i32 = arith.constant 0 : i32
    %c0_i32_0 = arith.constant 0 : i32
    %c0_i32_1 = arith.constant 0 : i32
    return %arg0, %c0_i32, %c0_i32_0 : i32, i32, i32
  }
  func.func @transform_3(%arg0: i32, %arg1: i32) -> (i32, i32, i32) {
    %c0_i32 = arith.constant 0 : i32
    %c0_i32_0 = arith.constant 0 : i32
    %c0_i32_1 = arith.constant 0 : i32
    return %arg0, %c0_i32, %c0_i32_0 : i32, i32, i32
  }
  func.func @transform_4(%arg0: i32, %arg1: i32) -> (i32, i32, i32) {
    %c0_i32 = arith.constant 0 : i32
    %c0_i32_0 = arith.constant 0 : i32
    return %arg0, %c0_i32, %arg1 : i32, i32, i32
  }
}

</mosaic_0001>

<bundles_post_ra>
// kernel: tpu_custom_call.1
= control target key start
LH: loop header
LB: loop body
LE: loop exit
PB: predicated region body
PF: predicated region fallthrough
CT: control target
= control target key end

     0   :  { %9 = vsyncpa [#allocation3], 0  ;;  %s1035_s0 = inlined_call_operand.hbm [shape: f32[2,32,128], index: 0, kind: input, shape index: {}]   ;;  %s1036_s1 = inlined_call_operand.vmem [shape: s32[2,2,128], index: 1, kind: input, shape index: {}]   ;;  %s1037_s2 = inlined_call_operand.vmem [shape: f32[2,8,8], index: 2, kind: input, shape index: {}]   ;;  %s1038_s3 = inlined_call_operand.vmem [shape: f32[2,8,4], index: 3, kind: input, shape index: {}]   ;;  %s1039_s4 = inlined_call_operand.hbm [shape: f32[2,8,128], index: 4, kind: output, shape index: {}]  }
   0x1   :  { %11 = vsyncpa [#allocation3 + $0x1], 0 }
   0x2   :  { %12 = vsyncpa [#allocation4], 0 }
   0x3   :  { %14 = vsyncpa [#allocation4 + $0x1], 0  ;;  %s863_s15 = smov 0   ;;  %s865_s16 = smov 0  }
   0x4   :  { %s867_s17 = smov 0   ;;  %s869_s18 = smov 0  }
   0x5   :  { %s871_s19 = smov 0   ;;  %s873_s20 = smov 0  }
   0x6 LB: > { %s609_s21 = sadd.s32 4294967295, %s828_s20   ;;  %s610_s22 = sadd.s32 4294967294, %s828_s20   ;;  %s828_s20 = sphi %s873_s20, %s20_s20   ;;  %s824_s19 = sphi %s871_s19, %s1050_s19   ;;  %s820_s18 = sphi %s869_s18, %s1049_s18   ;;  %s816_s17 = sphi %s867_s17, %s1048_s17   ;;  %s812_s16 = sphi %s865_s16, %s1047_s16   ;;  %s808_s15 = sphi %s863_s15, %s1046_s15  }
   0x7   : > { %s32_s23 = sadd.s32 1, %s824_s19  ;;  %s41_s24 = sadd.s32 1, %s816_s17 }
   0x8   : > { %p34_p0 = scmp.ge.s32.totalorder %s32_s23, 2  ;;  %p48_p1 = scmp.ne.s32.totalorder %s816_s17, %s812_s16 }
   0x9   : > { %p49_p2 = scmp.eq.s32.totalorder %s828_s20, 0  ;;  %p54_p3 = scmp.ne.s32.totalorder %s812_s16, %s808_s15 }
   0xa   : > { %s1052_s23 = smov (%p34_p0, %s32_s23), 0  ;;  %p55_p5 = scmp.eq.s32.totalorder %s609_s21, 0 }
   0xb   : > { %p904_p4 = por %p49_p2, %p48_p1  ;;  %s36_s26 = ssub.s32 %s824_s19, %s1052_s23 }
   0xc   : > { %p160_p6 = scmp.eq.s32.totalorder %s609_s21, 1  ;;  %p39_p7 = scmp.eq.s32.totalorder %s36_s26, 0 }
   0xd   : > { %p910_p8 = por %p55_p5, %p54_p3  ;;  %p166_p10 = scmp.eq.s32.totalorder %s610_s22, 1 }
   0xe   : > { %p914_p9 = por %p160_p6, %p48_p1  ;;  %p612_p12 = scmp.ge.s32.totalorder %s828_s20, 2 }
   0xf   : > { %s919_s29 = scalar_select %p39_p7, %s816_s17, %s41_s24  }
  0x10   : > { %p921_p11 = por %p166_p10, %p54_p3  ;;  %p643_p13 = scmp.lt.s32.totalorder %s828_s20, 2 }
  0x11   : > { %s186_s5 = sand.u32 1, %s816_s17   ;;  %s630_s7 = sshll.u32 %s824_s19, 5 }
  0x12   : > { %s613_s6 = sshll.u32 %s186_s5, 5  ;;  %s196_s10 = scalar_lea.hbm %s1035_s0, %s630_s7 }
  0x13   : > { %s190_s11 = scalar_lea.vmem [#allocation2], %s613_s6  ;;  %s197_s13 = sshll.u32 %s196_s10, 4  ;;  %s198_s13 = int_to_ptr.hbm [resolvable:$true] %s197_s13 }
  0x14   : > { %s199_s12 = sshll.u32 %s190_s11, 4  ;;  %p636_p0 = pnand %p643_p13, %p904_p4  ;;  %s200_s12 = int_to_ptr.vmem [resolvable:$true] %s199_s12 }
  0x15   : > { %p616_p1 = scmp.ge.s32.totalorder %s828_s20, 1  ;;  %s187_s14 = scalar_lea.sflag [#allocation3], %s186_s5 }
  0x16   : > { %s830_s21 = smov 128   ;;  %s831_s22 = smov 8  }
  0x17   : > { %638 = dma.hbm_to_vmem [thread:$0]  (!%p636_p0), %s198_s13, 512, %s200_s12, %s187_s14, %s830_s21, %s830_s21, %s831_s22  }
  0x18   : > { %p231_p2 = scmp.lt.s32.totalorder %s828_s20, 3 }
  0x1a   : > { %p232_p3 = pnand %p616_p1, %p231_p2 }
  0x1b   : > { %s937_s24 = sand.u32 (!%p232_p3), 1, %s812_s16  }
  0x1c   : > { %235 = sbr.rel (%p232_p3) target bundleno = 201 (0xc9), region = 36  ;;  %s617_s26 = sshll.u32 (!%p232_p3), %s937_s24, 5 }
  0x1d   : > { %s238_s6 = scalar_lea.sflag (!%p232_p3), [#allocation3], %s937_s24  ;;  %s941_s7 = scalar_lea.vmem (!%p232_p3), [#allocation2], %s617_s26 }
  0x21   : > { %799 = dma.done.wait (%p910_p8), %s238_s6, 512  }
  0x22   : > { %801 = vsyncadd (%p910_p8), %s238_s6, 4294966784  ;;  %p282_p4 = scmp.lt.s32.totalorder %s820_s18, 1  ;;  %v832_v0 = vmov 3   ;;  %v332_v1 = vlaneseq  ;;  %v833_v2 = vmov 2   ;;  %vm394_vm0 = vcmask 64512   ;;  %v297_v12 = vld [vmem:[%s941_s7] sm:$0xff] }
  0x23   : > { %703 = vset.pattern.permute.xlu1 %v832_v0  ;;  %701 = vset.pattern.permute.xlu0 %v833_v2  ;;  %v834_v9 = vmov 1.0   ;;  %v835_v10 = vmov 1   ;;  %v836_v11 = vmov 0   ;;  %v298_v13 = vld [vmem:[%s941_s7 + $0x8] sm:$0xff]  ;;  %v299_v14 = vld [vmem:[%s941_s7 + $0x10] sm:$0xff]  ;;  %v300_v15 = vld [vmem:[%s941_s7 + $0x18] sm:$0xff] }
  0x24   : > { %s283_s25 = scalar_select %p282_p4, %s820_s18, 1  ;;  %v952_v3 = vshrl.u32 %v332_v1, 7  ;;  %v301_v16 = vmax.f32 %v297_v12, %v298_v13  ;;  %v302_v17 = vmax.f32 %v299_v14, %v300_v15 }
  0x25   : > { %s618_s26 = sshll.u32 %s937_s24, 3  ;;  %s627_s7 = sshll.u32 %s820_s18, 3 }
  0x26   : > { %s619_s5 = sshll.u32 %s283_s25, 1  ;;  %s620_s8 = sshll.u32 %s283_s25, 3  ;;  %v303_v18 = vmax.f32 %v301_v16, %v302_v17  ;;  %vm337_vm2 = vcmp.ge.s32.totalorder %v952_v3, 1  ;;  %v334_v46 = vadd.s32 8, %v952_v3  ;;  %v335_v47 = vadd.s32 16, %v952_v3 }
  0x27   : > { %s288_s11 = scalar_lea.vmem %s1036_s1, %s619_s5  ;;  %s292_s13 = scalar_lea.vmem %s1037_s2, %s620_s8  ;;  %v336_v48 = vadd.s32 24, %v952_v3  ;;  %v363_v51 = vsub.s32 32, %v952_v3 }
  0x28   : > { %s296_s22 = scalar_lea.vmem %s1038_s3, %s620_s8  ;;  %v960_v4 = vld [vmem:[%s288_s11] sm:$0x3]  ;;  %v304_v19 = vrot.slane %v303_v18, 4  ;;  %v364_v52 = vsub.s32 32, %v334_v46  ;;  %v365_v53 = vsub.s32 32, %v335_v47  ;;  %s984_s6 = scalar_lea.vmem [#allocation5], %s618_s26 }
  0x29   : > { %v387_v5 = vld [vmem:[%s296_s22] sm:$0xff]  ;;  %v388_v6 = vperm.slane %v960_v4, 0  ;;  %v366_v55 = vsub.s32 32, %v336_v48  ;;  %v367_v59 = vcvt.s32.f32 %v363_v51  ;;  %s484_s8 = scalar_lea.hbm %s1039_s4, %s627_s7  ;;  %s486_s9 = sshll.u32 %s984_s6, 4  ;;  %s487_s9 = int_to_ptr.vmem [resolvable:$true] %s486_s9 }
  0x2a   : > { %435 = vperm.xlu1 %703, %v387_v5   ;;  %421 = vperm.xlu0 %701, %v387_v5   ;;  %v386_v7 = vld [vmem:[%s292_s13] sm:$0xff]  ;;  %v305_v20 = vmax.f32 %v303_v18, %v304_v19  ;;  %v368_v57 = vcvt.s32.f32 %v364_v52  ;;  %v369_v60 = vcvt.s32.f32 %v365_v53  ;;  %s488_s10 = sshll.u32 %s484_s8, 4  ;;  %s473_s18 = scalar_lea.sflag [#allocation4], %s937_s24  ;;  %s489_s10 = int_to_ptr.hbm [resolvable:$true] %s488_s10 }
  0x2b   : > { %vm964_vm1 = vcmp.eq.s32.totalorder %v952_v3, %v388_v6  ;;  %v370_v61 = vcvt.s32.f32 %v366_v55  ;;  %s760_s11 = sshra.s32 %s489_s10, 4  ;;  %s766_s14 = scalar_lea.hbm %s1039_s4, 16  ;;  %s761_s11 = int_to_ptr.hbm [resolvable:$true] %s760_s11 }
  0x2c   : > { %623 = vmatpush.msk.msra.mxu0 %vm964_vm1, %v834_v9  ;;  %v306_v21 = vrot.slane %v305_v20, 2  ;;  %s762_s12 = scalar_lea.hbm %s761_s11, 8  ;;  %p767_p8 = scmp.lt.s32.totalorder %s761_s11, %s1039_s4 }
  0x2d   : > { %624 = vmatmul.msk.f32.vlgmr.msra.gmra.mxu0 %vm394_vm0, %v386_v7  ;;  %p763_p5 = scmp.ne.s32.totalorder %s761_s11, %s762_s12  ;;  %p768_p10 = scmp.lt.s32.totalorder %s766_s14, %s762_s12 }
  0x2e   : > { %v307_v22 = vmax.f32 %v305_v20, %v306_v21 }
  0x2f   : > { %p764_p6 = pnand %p763_p5, %p914_p9  ;;  %p769_p13 = por %p768_p10, %p767_p8 }
  0x30   : > { %v308_v23 = vrot.slane %v307_v22, 1 }
  0x31   : > { %p765_p7 = pneg %p764_p6 }
  0x32   : > { %704 = vset.pattern.permute.xlu1 %v835_v10  ;;  %702 = vset.pattern.permute.xlu0 %v836_v11  ;;  %v309_v24 = vmax.f32 %v307_v22, %v308_v23  ;;  %v837_v23 = vmov 0.0  }
  0x33   : > { %441 = vperm.xlu1 %704, %v387_v5   ;;  %427 = vperm.xlu0 %702, %v387_v5   ;;  %471 = vst [vmem:[%s984_s6 + $0x3] sm:$0x1f] %v837_v23  ;;  %p770_p0 = pnand %p769_p13, %p765_p7 }
  0x34   : > { %v310_v25 = vsub.f32 %v297_v12, %v309_v24  ;;  %v311_v26 = vsub.f32 %v298_v13, %v309_v24  ;;  %v312_v27 = vsub.f32 %v299_v14, %v309_v24  ;;  %v313_v28 = vsub.f32 %v300_v15, %v309_v24 }
  0x36   : > { %v314_v29 = vmul.f32 1.442695, %v310_v25  ;;  %v316_v30 = vmul.f32 1.442695, %v311_v26  ;;  %v318_v31 = vmul.f32 1.442695, %v312_v27 }
  0x37   : > { %v320_v32 = vmul.f32 1.442695, %v313_v28 }
  0x38   : > { %706 = vpow2.f32 %v314_v29 }
  0x39   : > { %708 = vpow2.f32 %v316_v30 }
  0x3a   : > { %710 = vpow2.f32 %v318_v31 }
  0x3b   : > { %705 = vset.pattern.permute.xlu0 %v835_v10  ;;  %712 = vpow2.f32 %v320_v32 }
  0x3e   : > { %v707_v33 = vpop.eup %706 }
  0x3f   : > { %v709_v34 = vpop.eup %708  ;;  %v341_v35 = vsel %vm337_vm2, %v707_v33, -1.0 }
  0x40   : > { %v711_v36 = vpop.eup %710  ;;  %v345_v37 = vmax.f32 %v341_v35, %v709_v34  ;;  %v322_v43 = vadd.f32 %v709_v34, %v707_v33 }
  0x41   : > { %v713_v38 = vpop.eup %712 }
  0x42   : > { %v346_v39 = vmax.f32 %v711_v36, %v713_v38  ;;  %v323_v45 = vadd.f32 %v711_v36, %v322_v43 }
  0x44   : > { %v347_v40 = vmax.f32 %v345_v37, %v346_v39  ;;  %v324_v50 = vadd.f32 %v713_v38, %v323_v45 }
  0x46   : > { %v348_v41 = vrot.slane %v347_v40, 4  ;;  %v325_v56 = vrot.slane %v324_v50, 4 }
  0x48   : > { %v349_v42 = vmax.f32 %v347_v40, %v348_v41  ;;  %v326_v62 = vadd.f32 %v325_v56, %v324_v50  ;;  %v462_v50 = vrot.slane %v960_v4, 1 }
  0x4a   : > { %v350_v44 = vrot.slane %v349_v42, 2  ;;  %v327_v63 = vrot.slane %v326_v62, 2  ;;  %vm463_vm9 = vcmp.eq.s32.totalorder %v960_v4, %v462_v50 }
  0x4c   : > { %v351_v49 = vmax.f32 %v349_v42, %v350_v44  ;;  %v328_v7 = vadd.f32 %v327_v63, %v326_v62 }
  0x4e   : > { %v352_v54 = vrot.slane %v351_v49, 1  ;;  %v329_v10 = vrot.slane %v328_v7, 1 }
  0x50   : > { %v353_v58 = vmax.f32 %v351_v49, %v352_v54  ;;  %v330_v12 = vadd.f32 %v329_v10, %v328_v7 }
  0x52   : > { %vm355_vm3 = vcmp.ge.f32.partialorder %v341_v35, %v353_v58  ;;  %vm356_vm4 = vcmp.ge.f32.partialorder %v709_v34, %v353_v58  ;;  %vm357_vm5 = vcmp.ge.f32.partialorder %v711_v36, %v353_v58  ;;  %vm358_vm6 = vcmp.ge.f32.partialorder %v713_v38, %v353_v58 }
  0x53   : > { %vm359_vm7 = vmand %vm355_vm3, %vm337_vm2  ;;  %v372_v0 = vsel %vm356_vm4, %v368_v57, 0.0  ;;  %v373_v1 = vsel %vm357_vm5, %v369_v60, 0.0  ;;  %v374_v2 = vsel %vm358_vm6, %v370_v61, 0.0  ;;  %714 = vrcp.f32 %v330_v12 }
  0x54   : > { %v371_v5 = vsel %vm359_vm7, %v367_v59, 0.0  ;;  %v376_v6 = vmax.f32 %v373_v1, %v374_v2  ;;  %v390_v36 = vperm.slane %v960_v4, 1 }
  0x55   : > { %v375_v9 = vmax.f32 %v371_v5, %v372_v0 }
  0x56   : > { %vm391_vm8 = vcmp.eq.s32.totalorder %v952_v3, %v390_v36 }
  0x57   : > { %v377_v11 = vmax.f32 %v375_v9, %v376_v6 }
  0x59   : > { %v378_v13 = vrot.slane %v377_v11, 4  ;;  %v715_v19 = vpop.eup %714 }
  0x5a   : > { %v354_v21 = vmul.f32 %v715_v19, %v353_v58 }
  0x5b   : > { %v379_v14 = vmax.f32 %v377_v11, %v378_v13 }
  0x5c   : > { %466 = vst [vmem:[%s984_s6] sm:$0x1] %v354_v21 }
  0x5d   : > { %v380_v16 = vrot.slane %v379_v14, 2 }
  0x5f   : > { %v381_v18 = vmax.f32 %v379_v14, %v380_v16 }
  0x61   : > { %v382_v20 = vrot.slane %v381_v18, 1 }
  0x63   : > { %v383_v22 = vmax.f32 %v381_v18, %v382_v20 }
  0x65   : > { %v384_v24 = vsub.f32 32.0, %v383_v22 }
  0x67   : > { %467 = vst [vmem:[%s984_s6 + $0x1] sm:$0x1] %v384_v24 }
  0x9c   : > { %v436_v15 = vpop.permute.xlu1 %435  ;;  %v422_v17 = vpop.permute.xlu0 %421 }
  0xa5   : > { %v442_v25 = vpop.permute.xlu1 %441  ;;  %v428_v27 = vpop.permute.xlu0 %427 }
  0xaa   : > { %v415_v26 = vpop.f32.mrf.mxu0 }
  0xab   : > { %v418_v28 = vperm.slane %v415_v26, 2  ;;  %v433_v29 = vperm.slane %v415_v26, 3  ;;  %v439_v30 = vperm.slane %v415_v26, 1  ;;  %v425_v31 = vperm.slane %v415_v26, 0 }
  0xad   : > { %v438_v32 = vmin.f32 %v433_v29, %v436_v15  ;;  %v444_v33 = vmax.f32 %v439_v30, %v442_v25  ;;  %v424_v34 = vmin.f32 %v418_v28, %v422_v17  ;;  %v430_v35 = vmax.f32 %v425_v31, %v428_v27 }
  0xaf   : > { %v445_v37 = vsub.f32 %v438_v32, %v444_v33  ;;  %v431_v38 = vsub.f32 %v424_v34, %v430_v35 }
  0xb1   : > { %v446_v39 = vmax.f32 %v445_v37, 0.0  ;;  %v432_v40 = vmax.f32 %v431_v38, 0.0 }
  0xb3   : > { %v447_v41 = vmul.f32 %v446_v39, %v432_v40 }
  0xb5   : > { %v448_v42 = vsel %vm964_vm1, 0.0, %v447_v41 }
  0xb6   : > { %v449_v43 = vsel %vm391_vm8, %v448_v42, 0.0  ;;  %v456_v44 = vrot.slane %v448_v42, 4 }
  0xb7   : > { %v450_v45 = vrot.slane %v449_v43, 4 }
  0xb8   : > { %v457_v46 = vmax.f32 %v448_v42, %v456_v44 }
  0xb9   : > { %v451_v47 = vmax.f32 %v449_v43, %v450_v45 }
  0xba   : > { %v458_v48 = vrot.slane %v457_v46, 2 }
  0xbb   : > { %v452_v49 = vrot.slane %v451_v47, 2 }
  0xbc   : > { %v459_v51 = vmax.f32 %v457_v46, %v458_v48 }
  0xbd   : > { %v453_v52 = vmax.f32 %v451_v47, %v452_v49 }
  0xbe   : > { %v460_v3 = vrot.slane %v459_v51, 1 }
  0xbf   : > { %v454_v8 = vrot.slane %v453_v52, 1 }
  0xc0   : > { %v461_v53 = vmax.f32 %v459_v51, %v460_v3 }
  0xc1   : > { %v455_v54 = vmax.f32 %v453_v52, %v454_v8 }
  0xc3   : > { %v464_v55 = vsel %vm463_vm9, %v461_v53, %v455_v54 }
  0xc4   : > { %vm465_vm10 = vcmp.gt.f32.partialorder %v464_v55, 0.0 }
  0xc5   : > { %v625_v56 = vsel %vm465_vm10, 1.0, %v837_v23 }
  0xc6   : > { %470 = vst [vmem:[%s984_s6 + $0x2] sm:$0x1] %v625_v56 }
  0xc7   : > { %773 = shalt.err (!%p770_p0)
}
  0xc8   : > { %633 = dma.vmem_to_hbm [thread:$0]  (%p914_p9), %s487_s9, 128, %s489_s10, %s473_s18  }
  0xc9 PF: > { %s500_s24 = sand.u32 1, %s808_s15   ;;  %p640_p1 = pnand %p612_p12, %p921_p11 }
  0xca   : > { %s501_s26 = scalar_lea.sflag [#allocation4], %s500_s24 }
  0xcb   : > { %p641_p2 = pneg %p640_p1 }
  0xcd   : > { %803 = dma.done.wait (%p641_p2), %s501_s26, 128  }
  0xce   : > { %805 = vsyncadd (%p641_p2), %s501_s26, 4294967168  ;;  %s20_s20 = sadd.s32 1, %s828_s20   ;;  %s1046_s15 = smov %s812_s16 }
  0xcf   : > { %p17_p3 = scmp.ge.s32.totalorder %s20_s20, 4   ;;  %s1047_s16 = smov %s816_s17 }
  0xd0   : > { %s1048_s17 = smov %s919_s29  ;;  %s1049_s18 = smov %s824_s19 }
  0xd1   : > { %s1050_s19 = smov %s1052_s23  ;;  %19 = sbr.rel (!%p17_p3) target bundleno = 6 (0x6), region = 90 }
  0xd6   :  { %507 = vsyncpa [#allocation3], 1 }
  0xd7   :  { %509 = vsyncpa [#allocation3 + $0x1], 1 }
  0xd8   :  { %510 = vsyncpa [#allocation4], 1 }
  0xd9   :  { %512 = vsyncpa [#allocation4 + $0x1], 1 }

</bundles_post_ra>
